<compile_context>
chip_gen: v6e
topology: v6e:2x2x1
jax: 0.10.0
libtpu: 0.0.40
codegen_flags: <defaults>
</compile_context>

<pallas_src>
import functools

import jax
import jax.numpy as jnp
import numpy as np
from jax.experimental import pallas as pl
from jax.experimental.pallas import tpu as pltpu


def _round_up(x, m):
    return (x + m - 1) // m * m


def _mobilenet_logit_kernel(xs_ref, wc_ref, bc_ref, wf_ref, bf_ref, out_ref,
                            acc_ref, *, dhw, tile_r, inv_dhw):
    # xs_ref : (tile_r, K_pad)      im2col patch rows for (batch n, tile t)  (bf16 or f32)
    # wc_ref : (K_pad, Cout_pad)    conv weight, GEMM layout (zero-padded)
    # bc_ref : (1, Cout_pad)        conv bias (f32, zero-padded)
    # wf_ref : (Cout_pad, Ncls_pad) fc weight transposed (f32, zero-padded)
    # bf_ref : (1, Ncls_pad)        fc bias (f32, zero-padded)
    # out_ref: (1, 1, Ncls_pad)     logits row for batch n
    # acc_ref: (1, Cout_pad) f32    running per-channel sum for the global average pool
    t = pl.program_id(1)
    n_tiles = pl.num_programs(1)

    @pl.when(t == 0)
    def _init():
        acc_ref[...] = jnp.zeros_like(acc_ref)

    # conv-as-GEMM on the MXU with f32 accumulation, then bias + ReLU on the f32 result (VPU).
    conv = jnp.dot(xs_ref[...], wc_ref[...], preferred_element_type=jnp.float32)
    conv = jnp.maximum(conv + bc_ref[...], 0.0)

    # Mask rows that only exist because dhw was rounded up to a multiple of tile_r
    # (otherwise they would contribute relu(bias) to the pooled sum).
    row_ids = t * tile_r + jax.lax.broadcasted_iota(jnp.int32, (tile_r, 1), 0)
    conv = jnp.where(row_ids < dhw, conv, 0.0)

    # AdaptiveAvgPool3d((1,1,1)): accumulate per-channel sums across the row tiles.
    acc_ref[...] += jnp.sum(conv, axis=0, keepdims=True)

    @pl.when(t == n_tiles - 1)
    def _finalize():
        pooled = acc_ref[...] * inv_dhw                              # (1, Cout_pad) mean
        logits = jnp.dot(pooled, wf_ref[...],
                         preferred_element_type=jnp.float32) + bf_ref[...]
        out_ref[...] = logits.reshape(out_ref.shape)


def mobilenet_logit_forward(x_ncdhw, conv_w, conv_b, fc_w, fc_b,
                            *, compute_dtype=jnp.bfloat16, tile_rows=2048):
    """x_ncdhw: (N, 3, D, H, W); conv_w: (16,3,3,3,3) OIDHW; conv_b: (16,);
       fc_w: (61, 16); fc_b: (61,).  Returns logits (N, 61) in f32."""
    N, Cin, D, H, W = x_ncdhw.shape
    Cout = conv_w.shape[0]
    n_cls = fc_w.shape[0]
    dhw = D * H * W

    K = 27 * Cin
    K_pad = _round_up(K, 128)            # 81 -> 128: unmasked vld, clean MXU K pass
    Cout_pad = _round_up(Cout, 128)      # 16 -> 128
    ncls_pad = _round_up(n_cls, 128)     # 61 -> 128: unmasked vst on the logits row

    # Row tile: multiple of 8, capped so the double-buffered bf16 xs tile + f32 conv
    # intermediate stay far below v7x's 32 MiB scoped / 64 MiB physical VMEM.
    tile_r = min(_round_up(dhw, 8), _round_up(tile_rows, 8))
    rows_pad = _round_up(dhw, tile_r)
    n_tiles = rows_pad // tile_r

    # ---- glue (plain JAX): layout transpose, zero padding, im2col patch extraction ----
    # TODO(synk): at real MobileNet spatial sizes the im2col slab should be formed in-kernel
    #             from the padded NDHWC activation (27 shifted GEMMs) to avoid the ~27x HBM
    #             expansion; kept in the JAX wrapper here.
    x = jnp.transpose(x_ncdhw, (0, 2, 3, 4, 1))                       # (N, D, H, W, Cin)
    xp = jnp.pad(x, ((0, 0), (1, 1), (1, 1), (1, 1), (0, 0)))         # padding=1
    patches = jnp.stack(
        [xp[:, kd:kd + D, kh:kh + H, kw:kw + W, :]
         for kd in range(3) for kh in range(3) for kw in range(3)],
        axis=4)                                                       # (N, D, H, W, 27, Cin)
    xs = patches.reshape(N, dhw, K).astype(jnp.float32)
    xs = jnp.pad(xs, ((0, 0), (0, rows_pad - dhw), (0, K_pad - K)))
    xs = xs.reshape(N * rows_pad, K_pad).astype(compute_dtype)

    # conv_w (Cout, Cin, kD, kH, kW) -> (kD, kH, kW, Cin, Cout) -> (K, Cout) -> pad
    wc = jnp.transpose(conv_w, (2, 3, 4, 1, 0)).reshape(K, Cout).astype(jnp.float32)
    wc = jnp.pad(wc, ((0, K_pad - K), (0, Cout_pad - Cout))).astype(compute_dtype)
    bc = jnp.pad(conv_b.astype(jnp.float32), (0, Cout_pad - Cout)).reshape(1, Cout_pad)
    wf = jnp.pad(fc_w.T.astype(jnp.float32),
                 ((0, Cout_pad - Cout), (0, ncls_pad - n_cls)))       # (Cout_pad, ncls_pad)
    bf = jnp.pad(fc_b.astype(jnp.float32), (0, ncls_pad - n_cls)).reshape(1, ncls_pad)

    kernel = functools.partial(_mobilenet_logit_kernel,
                               dhw=dhw, tile_r=tile_r, inv_dhw=1.0 / dhw)

    out = pl.pallas_call(
        kernel,
        out_shape=jax.ShapeDtypeStruct((N, 1, ncls_pad), jnp.float32),
        grid_spec=pltpu.PrefetchScalarGridSpec(
            num_scalar_prefetch=0,
            grid=(N, n_tiles),
            in_specs=[
                # xs: per-(batch, tile) row slab — pipelined / double-buffered.
                pl.BlockSpec((tile_r, K_pad), lambda n, t: (n * n_tiles + t, 0)),
                # weights / biases: tiny, kept resident.
                pl.BlockSpec((K_pad, Cout_pad), lambda n, t: (0, 0)),
                pl.BlockSpec((1, Cout_pad), lambda n, t: (0, 0)),
                pl.BlockSpec((Cout_pad, ncls_pad), lambda n, t: (0, 0)),
                pl.BlockSpec((1, ncls_pad), lambda n, t: (0, 0)),
            ],
            out_specs=pl.BlockSpec((1, 1, ncls_pad), lambda n, t: (n, 0, 0)),
            scratch_shapes=[pltpu.VMEM((1, Cout_pad), jnp.float32)],
        ),
        compiler_params=pltpu.CompilerParams(
            dimension_semantics=("parallel", "arbitrary"),
            vmem_limit_bytes=32 * 1024 * 1024,
        ),
    )(xs, wc, bc, wf, bf)

    return out.reshape(N, ncls_pad)[:, :n_cls]


def _reference_forward(x_ncdhw, conv_w, conv_b, fc_w, fc_b):
    y = jax.lax.conv_general_dilated(
        x_ncdhw, conv_w, window_strides=(1, 1, 1),
        padding=[(1, 1), (1, 1), (1, 1)],
        dimension_numbers=("NCDHW", "OIDHW", "NCDHW"))
    y = jax.nn.relu(y + conv_b.reshape(1, -1, 1, 1, 1))
    pooled = jnp.mean(y, axis=(2, 3, 4))          # AdaptiveAvgPool3d((1,1,1)) + flatten
    return pooled @ fc_w.T + fc_b


if __name__ == "__main__":
    # Small shapes consistent with the module: Conv3d expects 3 input channels.
    N, Cin, D, H, W = 2, 3, 4, 8, 8
    Cout, n_cls = 16, 61

    key = jax.random.PRNGKey(0)
    k_x, k_cw, k_cb, k_fw, k_fb = jax.random.split(key, 5)

    x = jax.random.normal(k_x, (N, Cin, D, H, W), dtype=jnp.float32)
    conv_w = 0.1 * jax.random.normal(k_cw, (Cout, Cin, 3, 3, 3), dtype=jnp.float32)
    conv_b = 0.1 * jax.random.normal(k_cb, (Cout,), dtype=jnp.float32)
    fc_w = 0.1 * jax.random.normal(k_fw, (n_cls, Cout), dtype=jnp.float32)
    fc_b = 0.1 * jax.random.normal(k_fb, (n_cls,), dtype=jnp.float32)

    ref = jax.block_until_ready(_reference_forward(x, conv_w, conv_b, fc_w, fc_b))

    # 1) f32 path: exact-ish check of the kernel structure (single row tile per batch).
    out_f32 = jax.block_until_ready(
        mobilenet_logit_forward(x, conv_w, conv_b, fc_w, fc_b,
                                compute_dtype=jnp.float32))
    np.testing.assert_allclose(np.asarray(out_f32), np.asarray(ref), rtol=1e-4, atol=2e-4)

    # 2) f32 path with a small row tile: exercises multi-tile accumulation + row masking.
    out_tiled = jax.block_until_ready(
        mobilenet_logit_forward(x, conv_w, conv_b, fc_w, fc_b,
                                compute_dtype=jnp.float32, tile_rows=96))
    np.testing.assert_allclose(np.asarray(out_tiled), np.asarray(ref), rtol=1e-4, atol=2e-4)

    # 3) bf16 streaming path (default): halves HBM/VMEM bytes, f32 accumulation preserved.
    out_bf16 = jax.block_until_ready(
        mobilenet_logit_forward(x, conv_w, conv_b, fc_w, fc_b))
    np.testing.assert_allclose(np.asarray(out_bf16), np.asarray(ref), rtol=5e-2, atol=5e-2)

    assert out_bf16.shape == (N, n_cls)
    print("KERNEL_OK")
</pallas_src>

<mosaic_0001>
module attributes {stable_mosaic.version = 11 : i64} {
  func.func @_mobilenet_logit_kernel(%arg0: i32, %arg1: i32, %arg2: memref<256x128xf32, #tpu.memory_space<vmem>>, %arg3: memref<128x128xf32, #tpu.memory_space<vmem>>, %arg4: memref<1x128xf32, #tpu.memory_space<vmem>>, %arg5: memref<128x128xf32, #tpu.memory_space<vmem>>, %arg6: memref<1x128xf32, #tpu.memory_space<vmem>>, %arg7: memref<1x1x128xf32, #tpu.memory_space<vmem>>, %arg8: memref<1x128xf32, #tpu.memory_space<vmem>>) attributes {dimension_semantics = [#tpu.dimension_semantics<parallel>, #tpu.dimension_semantics<arbitrary>], iteration_bounds = array<i64: 2, 1>, scalar_prefetch = 0 : i64, scratch_operands = 1 : i64, tpu.core_type = #tpu.core_type<tc>, window_params = [{transform_indices = @transform_0, window_bounds = array<i64: 256, 128>}, {pipeline_mode = #tpu.pipeline_mode<synchronous>, transform_indices = @transform_1, window_bounds = array<i64: 128, 128>}, {pipeline_mode = #tpu.pipeline_mode<synchronous>, transform_indices = @transform_2, window_bounds = array<i64: 1, 128>}, {pipeline_mode = #tpu.pipeline_mode<synchronous>, transform_indices = @transform_3, window_bounds = array<i64: 128, 128>}, {pipeline_mode = #tpu.pipeline_mode<synchronous>, transform_indices = @transform_4, window_bounds = array<i64: 1, 128>}, {transform_indices = @transform_5, window_bounds = array<i64: 1, 1, 128>}]} {
    %c0_i32 = arith.constant 0 : i32
    %0 = arith.cmpi eq, %arg1, %c0_i32 : i32
    %1 = arith.extui %0 : i1 to i32
    %c0_i32_0 = arith.constant 0 : i32
    %2 = arith.cmpi ne, %1, %c0_i32_0 : i32
    scf.if %2 {
      %cst_16 = arith.constant 0.000000e+00 : f32
      %29 = vector.broadcast %cst_16 : f32 to vector<1x128xf32>
      %c0_17 = arith.constant 0 : index
      %c0_18 = arith.constant 0 : index
      %30 = vector.load %arg8[%c0_17, %c0_18] : memref<1x128xf32, #tpu.memory_space<vmem>>, vector<1x128xf32>
      tpu.vector_store %arg8[%c0_17, %c0_18], %29 {strides = array<i32>} : memref<1x128xf32, #tpu.memory_space<vmem>>, vector<1x128xf32>,
    } else {
    }
    %c0 = arith.constant 0 : index
    %c0_1 = arith.constant 0 : index
    %3 = vector.load %arg2[%c0, %c0_1] : memref<256x128xf32, #tpu.memory_space<vmem>>, vector<256x128xf32>
    %c0_2 = arith.constant 0 : index
    %c0_3 = arith.constant 0 : index
    %4 = vector.load %arg3[%c0_2, %c0_3] : memref<128x128xf32, #tpu.memory_space<vmem>>, vector<128x128xf32>
    %cst = arith.constant dense<0.000000e+00> : vector<256x128xf32>
    %5 = tpu.matmul %3, %4, %cst {dimension_numbers = #tpu.dot_dimension_numbers<[1], [0], [0], [1], [0, 0, 1, 1], [], []>} : vector<256x128xf32>, vector<128x128xf32>, vector<256x128xf32> -> vector<256x128xf32>
    %c0_4 = arith.constant 0 : index
    %c0_5 = arith.constant 0 : index
    %6 = vector.load %arg4[%c0_4, %c0_5] : memref<1x128xf32, #tpu.memory_space<vmem>>, vector<1x128xf32>
    %7 = vector.broadcast %6 : vector<1x128xf32> to vector<256x128xf32>
    %8 = arith.addf %5, %7 : vector<256x128xf32>
    %cst_6 = arith.constant 0.000000e+00 : f32
    %9 = vector.broadcast %cst_6 : f32 to vector<256x128xf32>
    %10 = arith.maximumf %8, %9 : vector<256x128xf32>
    %c256_i32 = arith.constant 256 : i32
    %11 = arith.muli %arg1, %c256_i32 : i32
    %12 = tpu.iota {dimensions = array<i32: 0>} : vector<256x1xi32>
    %13 = vector.broadcast %11 : i32 to vector<256x1xi32>
    %14 = arith.addi %13, %12 : vector<256x1xi32>
    %c256_i32_7 = arith.constant 256 : i32
    %15 = vector.broadcast %c256_i32_7 : i32 to vector<256x1xi32>
    %16 = arith.cmpi slt, %14, %15 : vector<256x1xi32>
    %cst_8 = arith.constant 0.000000e+00 : f32
    %17 = vector.shape_cast %16 : vector<256x1xi1> to vector<256x1xi1>
    %18 = vector.broadcast %17 : vector<256x1xi1> to vector<256x128xi1>
    %19 = vector.broadcast %cst_8 : f32 to vector<256x128xf32>
    %20 = arith.select %18, %10, %19 : vector<256x128xi1>, vector<256x128xf32>
    %c0_9 = arith.constant 0 : index
    %c0_10 = arith.constant 0 : index
    %21 = vector.load %arg8[%c0_9, %c0_10] : memref<1x128xf32, #tpu.memory_space<vmem>>, vector<1x128xf32>
    %cst_11 = arith.constant dense<0.000000e+00> : vector<128xf32>
    %22 = vector.multi_reduction <add>, %20, %cst_11 [0] : vector<256x128xf32> to vector<128xf32>
    %23 = vector.shape_cast %22 : vector<128xf32> to vector<1x128xf32>
    %24 = arith.addf %21, %23 : vector<1x128xf32>
    %c0_12 = arith.constant 0 : index
    %c0_13 = arith.constant 0 : index
    %25 = vector.load %arg8[%c0_12, %c0_13] : memref<1x128xf32, #tpu.memory_space<vmem>>, vector<1x128xf32>
    tpu.vector_store %arg8[%c0_12, %c0_13], %24 {strides = array<i32>} : memref<1x128xf32, #tpu.memory_space<vmem>>, vector<1x128xf32>,
    %c0_i32_14 = arith.constant 0 : i32
    %26 = arith.cmpi eq, %arg1, %c0_i32_14 : i32
    %27 = arith.extui %26 : i1 to i32
    %c0_i32_15 = arith.constant 0 : i32
    %28 = arith.cmpi ne, %27, %c0_i32_15 : i32
    scf.if %28 {
      %c0_16 = arith.constant 0 : index
      %c0_17 = arith.constant 0 : index
      %29 = vector.load %arg8[%c0_16, %c0_17] : memref<1x128xf32, #tpu.memory_space<vmem>>, vector<1x128xf32>
      %cst_18 = arith.constant 3.906250e-03 : f32
      %30 = vector.broadcast %cst_18 : f32 to vector<1x128xf32>
      %31 = arith.mulf %29, %30 : vector<1x128xf32>
      %c0_19 = arith.constant 0 : index
      %c0_20 = arith.constant 0 : index
      %32 = vector.load %arg5[%c0_19, %c0_20] : memref<128x128xf32, #tpu.memory_space<vmem>>, vector<128x128xf32>
      %cst_21 = arith.constant dense<0.000000e+00> : vector<1x128xf32>
      %33 = tpu.matmul %31, %32, %cst_21 {dimension_numbers = #tpu.dot_dimension_numbers<[1], [0], [0], [1], [0, 0, 1, 1], [], []>} : vector<1x128xf32>, vector<128x128xf32>, vector<1x128xf32> -> vector<1x128xf32>
      %c0_22 = arith.constant 0 : index
      %c0_23 = arith.constant 0 : index
      %34 = vector.load %arg6[%c0_22, %c0_23] : memref<1x128xf32, #tpu.memory_space<vmem>>, vector<1x128xf32>
      %35 = arith.addf %33, %34 : vector<1x128xf32>
      %36 = vector.shape_cast %35 : vector<1x128xf32> to vector<1x1x128xf32>
      %c0_24 = arith.constant 0 : index
      %c0_25 = arith.constant 0 : index
      %c0_26 = arith.constant 0 : index
      %37 = vector.load %arg7[%c0_24, %c0_25, %c0_26] : memref<1x1x128xf32, #tpu.memory_space<vmem>>, vector<1x1x128xf32>
      tpu.vector_store %arg7[%c0_24, %c0_25, %c0_26], %36 {strides = array<i32>} : memref<1x1x128xf32, #tpu.memory_space<vmem>>, vector<1x1x128xf32>,
    } else {
    }
    return
  }
  func.func @transform_0(%arg0: i32, %arg1: i32) -> (i32, i32) {
    %c1_i32 = arith.constant 1 : i32
    %0 = arith.muli %arg0, %c1_i32 : i32
    %1 = arith.addi %0, %arg1 : i32
    %c0_i32 = arith.constant 0 : i32
    %c0_i32_0 = arith.constant 0 : i32
    return %1, %c0_i32 : i32, i32
  }
  func.func @transform_1(%arg0: i32, %arg1: i32) -> (i32, i32) {
    %c0_i32 = arith.constant 0 : i32
    %c0_i32_0 = arith.constant 0 : i32
    %c0_i32_1 = arith.constant 0 : i32
    return %c0_i32, %c0_i32_0 : i32, i32
  }
  func.func @transform_2(%arg0: i32, %arg1: i32) -> (i32, i32) {
    %c0_i32 = arith.constant 0 : i32
    %c0_i32_0 = arith.constant 0 : i32
    %c0_i32_1 = arith.constant 0 : i32
    return %c0_i32, %c0_i32_0 : i32, i32
  }
  func.func @transform_3(%arg0: i32, %arg1: i32) -> (i32, i32) {
    %c0_i32 = arith.constant 0 : i32
    %c0_i32_0 = arith.constant 0 : i32
    %c0_i32_1 = arith.constant 0 : i32
    return %c0_i32, %c0_i32_0 : i32, i32
  }
  func.func @transform_4(%arg0: i32, %arg1: i32) -> (i32, i32) {
    %c0_i32 = arith.constant 0 : i32
    %c0_i32_0 = arith.constant 0 : i32
    %c0_i32_1 = arith.constant 0 : i32
    return %c0_i32, %c0_i32_0 : i32, i32
  }
  func.func @transform_5(%arg0: i32, %arg1: i32) -> (i32, i32, i32) {
    %c0_i32 = arith.constant 0 : i32
    %c0_i32_0 = arith.constant 0 : i32
    %c0_i32_1 = arith.constant 0 : i32
    return %arg0, %c0_i32, %c0_i32_0 : i32, i32, i32
  }
}

</mosaic_0001>

<bundles_post_ra>
// kernel: tpu_custom_call.1
= control target key start
LH: loop header
LB: loop body
LE: loop exit
PB: predicated region body
PF: predicated region fallthrough
CT: control target
= control target key end

     0   :  { %s1793_s0 = inlined_call_operand.hbm [shape: f32[512,128], index: 0, kind: input, shape index: {}]   ;;  %s1794_s1 = inlined_call_operand.hbm [shape: f32[128,128], index: 1, kind: input, shape index: {}]   ;;  %s1795_s2 = inlined_call_operand.vmem [shape: f32[1,128], index: 2, kind: input, shape index: {}]   ;;  %s1796_s3 = inlined_call_operand.hbm [shape: f32[128,128], index: 3, kind: input, shape index: {}]   ;;  %s1797_s4 = inlined_call_operand.vmem [shape: f32[1,128], index: 4, kind: input, shape index: {}]   ;;  %s1798_s5 = inlined_call_operand.hbm [shape: f32[2,1,128], index: 5, kind: output, shape index: {}]  }
   0x1   :  { %1801 = sst [smem:[#allocation13_spill]] %s1794_s1 }
   0x2   :  { %10 = vsyncpa [#allocation4], 0 }
   0x3   :  { %12 = vsyncpa [#allocation4 + $0x1], 0 }
   0x4   :  { %13 = vsyncpa [#allocation7], 0 }
   0x5   :  { %14 = vsyncpa [#allocation5], 0 }
   0x6   :  { %16 = vsyncpa [#allocation5 + $0x1], 0  ;;  %s1529_s18 = smov 0   ;;  %s1531_s19 = smov 0  }
   0x7   :  { %s1533_s20 = smov 0   ;;  %s1535_s21 = smov 0  }
   0x8   :  { %s1537_s22 = smov 0   ;;  %s1539_s23 = smov 0  }
   0x9 LB: > { %s1040_s24 = sadd.s32 4294967295, %s1489_s23   ;;  %s1041_s25 = sadd.s32 4294967294, %s1489_s23   ;;  %s1489_s23 = sphi %s1539_s23, %s22_s23   ;;  %s1485_s22 = sphi %s1537_s22, %s1819_s22   ;;  %s1481_s21 = sphi %s1535_s21, %s1818_s21   ;;  %s1477_s20 = sphi %s1533_s20, %s1817_s20   ;;  %s1473_s19 = sphi %s1531_s19, %s1816_s19   ;;  %s1469_s18 = sphi %s1529_s18, %s1815_s18  }
   0xa   : > { %p56_p0 = scmp.ne.s32.totalorder %s1473_s19, %s1469_s18  ;;  %p1563_p1 = scmp.eq.s32.totalorder %s1040_s24, 0 }
   0xb   : > { %p1567_p2 = scmp.eq.s32.totalorder %s1040_s24, 1  ;;  %p170_p3 = scmp.eq.s32.totalorder %s1041_s25, 1 }
   0xc   : > { %p1573_p4 = por %p1563_p1, %p56_p0  ;;  %p1042_p5 = scmp.ge.s32.totalorder %s1489_s23, 1 }
   0xd   : > { %p1578_p6 = por %p170_p3, %p56_p0  ;;  %p177_p7 = scmp.lt.s32.totalorder %s1489_s23, 3 }
   0xe   : > { %s1491_s6 = smov [#allocation6]   ;;  %s1492_s9 = smov [#allocation8]  }
   0xf   : > { %s1805_s29 = scalar_select %p1578_p6, 1, 0 }
  0x10   : > { %p1583_p8 = pnand %p1042_p5, %p177_p7  ;;  %s189_s7 = sshll.u32 %s1491_s6, 4  ;;  %s190_s7 = int_to_ptr.vmem [resolvable:$true] %s189_s7 }
  0x11   : > { %s205_s10 = sshll.u32 %s1492_s9, 4  ;;  %s1336_s11 = scalar_lea.vmem %s190_s7, 2048  ;;  %s206_s10 = int_to_ptr.vmem [resolvable:$true] %s205_s10 }
  0x12   : > { %p1250_p9 = pneg %p1583_p8  ;;  %p1337_p13 = scmp.ne.s32.totalorder %s190_s7, %s1336_s11 }
  0x13   : > { %p1344_p5 = scmp.lt.s32.totalorder %s190_s7, %s190_s7  ;;  %p1345_p7 = scmp.lt.s32.totalorder %s1336_s11, %s1336_s11 }
  0x14   : > { %p1592_p11 = pnand %p1250_p9, %p1563_p1 }
  0x15   : > { %p1346_p10 = por %p1345_p7, %p1344_p5 }
  0x16   : > { %p1327_p12 = pneg %p1592_p11 }
  0x18   : > { %p1339_p0 = pnand %p1337_p13, %p1327_p12 }
  0x1a   : > { %p1340_p3 = pneg %p1339_p0 }
  0x1c   : > { %p1347_p9 = pnand %p1346_p10, %p1340_p3 }
  0x1e   : > { %1350 = shalt.err (!%p1347_p9)
}
  0x1f   : > { %s1799_s12 = smov 128   ;;  %s1800_s13 = smov 8  }
  0x20   : > { %s1808_s1 = sld [smem:[#allocation13_spill]]  ;;  %s1362_s16 = scalar_lea.vmem %s206_s10, 2048 }
  0x21   : > { %p1363_p13 = scmp.ne.s32.totalorder %s206_s10, %s1362_s16  ;;  %p1370_p10 = scmp.lt.s32.totalorder %s206_s10, %s206_s10 }
  0x22   : > { %p1371_p3 = scmp.lt.s32.totalorder %s1362_s16, %s1362_s16 }
  0x23   : > { %p1365_p0 = pnand %p1363_p13, %p1327_p12 }
  0x24   : > { %p1372_p7 = por %p1371_p3, %p1370_p10 }
  0x25   : > { %p1366_p5 = pneg %p1365_p0 }
  0x26   : > { %1253 = dma.hbm_to_vmem [thread:$0]  (!%p1592_p11), %s1808_s1, 2048, %s190_s7, [#allocation7], %s1799_s12, %s1799_s12, %s1800_s13  }
  0x27   : > { %p1373_p9 = pnand %p1372_p7, %p1366_p5 }
  0x29   : > { %1376 = shalt.err (!%p1373_p9)
}
  0x2a   : > { %1256 = dma.hbm_to_vmem [thread:$0]  (!%p1592_p11), %s1796_s3, 2048, %s206_s10, [#allocation7], %s1799_s12, %s1799_s12, %s1800_s13  }
  0x2b   : > { %s34_s25 = sadd.s32 1, %s1485_s22  ;;  %s43_s6 = sadd.s32 1, %s1477_s20 }
  0x2c   : > { %p36_p12 = scmp.ge.s32.totalorder %s34_s25, 2  ;;  %p50_p13 = scmp.ne.s32.totalorder %s1477_s20, %s1473_s19 }
  0x2d   : > { %p51_p0 = scmp.eq.s32.totalorder %s1489_s23, 0  ;;  %p1267_p5 = scmp.lt.s32.totalorder %s1489_s23, 2 }
  0x2e   : > { %s1821_s25 = smov (%p36_p12, %s34_s25), 0  ;;  %p1630_p3 = por %p1567_p2, %p50_p13 }
  0x2f   : > { %p52_p10 = por %p51_p0, %p50_p13  ;;  %s40_s8 = ssub.s32 %s1485_s22, %s1821_s25 }
  0x30   : > { %s222_s9 = sand.u32 1, %s1477_s20   ;;  %p41_p7 = scmp.eq.s32.totalorder %s40_s8, 0 }
  0x31   : > { %s1046_s10 = sshll.u32 %s222_s9, 8  ;;  %s1057_s11 = sshll.u32 %s1485_s22, 12 }
  0x32   : > { %s1639_s14 = scalar_select %p41_p7, %s1477_s20, %s43_s6  }
  0x33   : > { %s233_s17 = scalar_lea.hbm %s1793_s0, %s1057_s11  ;;  %s226_s24 = scalar_lea.vmem [#allocation3], %s1046_s10 }
  0x34   : > { %s234_s12 = sshll.u32 %s226_s24, 4  ;;  %p1646_p11 = pnand %p1267_p5, %p52_p10  ;;  %s235_s12 = int_to_ptr.vmem [resolvable:$true] %s234_s12 }
  0x35   : > { %s223_s13 = scalar_lea.sflag [#allocation4], %s222_s9  ;;  %s1390_s8 = scalar_lea.vmem %s235_s12, 4096 }
  0x36   : > { %p1379_p2 = pneg %p1646_p11  ;;  %p1391_p9 = scmp.ne.s32.totalorder %s235_s12, %s1390_s8 }
  0x37   : > { %s1495_s6 = smov [#allocation3]  }
  0x38   : > { %p1393_p12 = pnand %p1391_p9, %p1379_p2  ;;  %s1395_s1 = sshll.u32 %s1495_s6, 4  ;;  %s1396_s1 = int_to_ptr.vmem [resolvable:$false] %s1395_s1 }
  0x39   : > { %s1397_s11 = scalar_lea.vmem %s1396_s1, 8192  ;;  %p1398_p0 = scmp.lt.s32.totalorder %s235_s12, %s1396_s1 }
  0x3a   : > { %p1394_p13 = pneg %p1393_p12  ;;  %p1399_p7 = scmp.lt.s32.totalorder %s1397_s11, %s1390_s8 }
  0x3c   : > { %p1400_p6 = por %p1399_p7, %p1398_p0 }
  0x3e   : > { %p1401_p5 = pnand %p1400_p6, %p1394_p13 }
  0x40   : > { %1404 = shalt.err (!%p1401_p5)
}
  0x41   : > { %s1811_s10 = smov 8   ;;  %s1812_s15 = smov 128  }
  0x42   : > { %1260 = dma.hbm_to_vmem [thread:$0]  (!%p1646_p11), %s233_s17, 4096, %s235_s12, %s223_s13, %s1812_s15, %s1812_s15, %s1811_s10  }
  0x43   : > { %246 = sbr.rel (%p1583_p8) target bundleno = 603 (0x25b), region = 40  ;;  %s1660_s9 = sand.u32 (!%p1583_p8), 1, %s1473_s19  }
  0x44   : > { %s1050_s1 = sshll.u32 (!%p1583_p8), %s1660_s9, 8  ;;  %s249_s16 = scalar_lea.sflag (!%p1583_p8), [#allocation4], %s1660_s9 }
  0x45   : > { %s1664_s24 = scalar_lea.vmem (!%p1583_p8), [#allocation3], %s1050_s1 }
  0x48   : > { %1456 = dma.done.wait (%p1573_p4), %s249_s16, 4096  }
  0x49   : > { %1458 = vsyncadd (%p1573_p4), %s249_s16, 4294963200 }
  0x4a   : > { %1460 = dma.done.wait (%p1563_p1), [#allocation7], 4096  }
  0x4b   : > { %1462 = vsyncadd (%p1563_p1), [#allocation7], 4294963200  ;;  %v340_v0 = vld [vmem:[#allocation6 + $0x78] sm:$0xff]  ;;  %v339_v1 = vld [vmem:[#allocation6 + $0x70] sm:$0xff]  ;;  %v1496_v48 = vmov 0.0   ;;  %vm1497_vm0 = vmmov 0  }
  0x4c   : > { %1123 = vmatprep.subr.mxu0 %v340_v0  ;;  %v338_v2 = vld [vmem:[#allocation6 + $0x68] sm:$0xff]  ;;  %v337_v3 = vld [vmem:[#allocation6 + $0x60] sm:$0xff]  ;;  %v336_v5 = vld [vmem:[#allocation6 + $0x58] sm:$0xff]  ;;  %292 = vst [vmem:[#allocation2] sm:$0x1] %v1496_v48  ;;  %1203 = vmatprep.subr.mxu1 %v1496_v48  ;;  %s1054_s13 = sshll.u32 %s1481_s21, 4 }
  0x4d   : > { %1124 = vmatpush3.msra.mxu0 %v340_v0  ;;  %v293_v4 = vld [vmem:[%s1664_s24] sm:$0xff]  ;;  %v335_v6 = vld [vmem:[#allocation6 + $0x50] sm:$0xff]  ;;  %v334_v7 = vld [vmem:[#allocation6 + $0x48] sm:$0xff]  ;;  %1235 = vmatprep.mubr.msk.f32.mxu1 %vm1497_vm0, %v1496_v48  ;;  %s285_s17 = scalar_lea.vmem [#allocation9], %s1660_s9  ;;  %s1751_s11 = scalar_lea.hbm %s1798_s5, %s1054_s13 }
  0x4e   : > { %1125 = vmatprep.subr.mxu0 %v339_v1  ;;  %1155 = vmatprep.mubr.f32.mxu0 %v293_v4  ;;  %v333_v8 = vld [vmem:[#allocation6 + $0x40] sm:$0xff]  ;;  %v332_v9 = vld [vmem:[#allocation6 + $0x38] sm:$0xff]  ;;  %v331_v10 = vld [vmem:[#allocation6 + $0x30] sm:$0xff]  ;;  %s946_s27 = sshll.u32 %s285_s17, 4  ;;  %s934_s10 = scalar_lea.sflag [#allocation5], %s1660_s9  ;;  %s947_s27 = int_to_ptr.vmem [resolvable:$true] %s946_s27 }
  0x4f   : > { %1126 = vmatpush3.msra.mxu0 %v339_v1  ;;  %v330_v11 = vld [vmem:[#allocation6 + $0x28] sm:$0xff]  ;;  %v329_v12 = vld [vmem:[#allocation6 + $0x20] sm:$0xff]  ;;  %v328_v13 = vld [vmem:[#allocation6 + $0x18] sm:$0xff]  ;;  %s1405_s15 = scalar_lea.vmem %s947_s27, 16  ;;  %s1498_s1 = smov [#allocation9]  }
  0x50   : > { %1127 = vmatprep.subr.mxu0 %v338_v2  ;;  %v327_v14 = vld [vmem:[#allocation6 + $0x10] sm:$0xff]  ;;  %v326_v15 = vld [vmem:[#allocation6 + $0x8] sm:$0xff]  ;;  %v325_v16 = vld [vmem:[#allocation6] sm:$0xff]  ;;  %p1406_p1 = scmp.ne.s32.totalorder %s947_s27, %s1405_s15  ;;  %s1409_s21 = sshll.u32 %s1498_s1, 4  ;;  %s1410_s21 = int_to_ptr.vmem [resolvable:$false] %s1409_s21 }
  0x51   : > { %1128 = vmatpush3.msra.mxu0 %v338_v2  ;;  %v294_v17 = vld [vmem:[%s1664_s24 + $0x8] sm:$0xff]  ;;  %v295_v18 = vld [vmem:[%s1664_s24 + $0x10] sm:$0xff]  ;;  %v296_v19 = vld [vmem:[%s1664_s24 + $0x18] sm:$0xff]  ;;  %s1411_s16 = scalar_lea.vmem %s1410_s21, 32  ;;  %p1412_p8 = scmp.lt.s32.totalorder %s947_s27, %s1410_s21 }
  0x52   : > { %1129 = vmatprep.subr.mxu0 %v337_v3  ;;  %v297_v20 = vld [vmem:[%s1664_s24 + $0x20] sm:$0xff]  ;;  %v298_v21 = vld [vmem:[%s1664_s24 + $0x28] sm:$0xff]  ;;  %v299_v22 = vld [vmem:[%s1664_s24 + $0x30] sm:$0xff]  ;;  %p1407_p4 = pnand %p1406_p1, %p1630_p3  ;;  %p1413_p10 = scmp.lt.s32.totalorder %s1411_s16, %s1405_s15 }
  0x53   : > { %1130 = vmatpush3.msra.mxu0 %v337_v3  ;;  %v300_v23 = vld [vmem:[%s1664_s24 + $0x38] sm:$0xff]  ;;  %v301_v24 = vld [vmem:[%s1664_s24 + $0x40] sm:$0xff]  ;;  %v302_v25 = vld [vmem:[%s1664_s24 + $0x48] sm:$0xff] }
  0x54   : > { %1131 = vmatprep.subr.mxu0 %v336_v5  ;;  %v303_v26 = vld [vmem:[%s1664_s24 + $0x50] sm:$0xff]  ;;  %v304_v27 = vld [vmem:[%s1664_s24 + $0x58] sm:$0xff]  ;;  %v305_v28 = vld [vmem:[%s1664_s24 + $0x60] sm:$0xff]  ;;  %p1408_p6 = pneg %p1407_p4  ;;  %p1414_p11 = por %p1413_p10, %p1412_p8 }
  0x55   : > { %1132 = vmatpush3.msra.mxu0 %v336_v5  ;;  %v306_v29 = vld [vmem:[%s1664_s24 + $0x68] sm:$0xff]  ;;  %v307_v30 = vld [vmem:[%s1664_s24 + $0x70] sm:$0xff]  ;;  %v308_v31 = vld [vmem:[%s1664_s24 + $0x78] sm:$0xff] }
  0x56   : > { %1133 = vmatprep.subr.mxu0 %v335_v6  ;;  %v309_v32 = vld [vmem:[%s1664_s24 + $0x80] sm:$0xff]  ;;  %v310_v33 = vld [vmem:[%s1664_s24 + $0x88] sm:$0xff]  ;;  %v311_v34 = vld [vmem:[%s1664_s24 + $0x90] sm:$0xff]  ;;  %p1415_p2 = pnand %p1414_p11, %p1408_p6 }
  0x57   : > { %1134 = vmatpush3.msra.mxu0 %v335_v6  ;;  %v312_v35 = vld [vmem:[%s1664_s24 + $0x98] sm:$0xff]  ;;  %v313_v36 = vld [vmem:[%s1664_s24 + $0xa0] sm:$0xff]  ;;  %v314_v37 = vld [vmem:[%s1664_s24 + $0xa8] sm:$0xff] }
  0x58   : > { %1135 = vmatprep.subr.mxu0 %v334_v7  ;;  %v315_v38 = vld [vmem:[%s1664_s24 + $0xb0] sm:$0xff]  ;;  %v316_v39 = vld [vmem:[%s1664_s24 + $0xb8] sm:$0xff]  ;;  %v317_v40 = vld [vmem:[%s1664_s24 + $0xc0] sm:$0xff] }
  0x59   : > { %1136 = vmatpush3.msra.mxu0 %v334_v7  ;;  %v318_v41 = vld [vmem:[%s1664_s24 + $0xc8] sm:$0xff]  ;;  %v319_v42 = vld [vmem:[%s1664_s24 + $0xd0] sm:$0xff]  ;;  %v320_v43 = vld [vmem:[%s1664_s24 + $0xd8] sm:$0xff] }
  0x5a   : > { %1137 = vmatprep.subr.mxu0 %v333_v8  ;;  %v321_v44 = vld [vmem:[%s1664_s24 + $0xe0] sm:$0xff]  ;;  %v322_v45 = vld [vmem:[%s1664_s24 + $0xe8] sm:$0xff]  ;;  %v323_v46 = vld [vmem:[%s1664_s24 + $0xf0] sm:$0xff] }
  0x5b   : > { %1138 = vmatpush3.msra.mxu0 %v333_v8  ;;  %v324_v47 = vld [vmem:[%s1664_s24 + $0xf8] sm:$0xff]  ;;  %v859_v50 = vld [vmem:[#allocation8 + $0x70] sm:$0xff]  ;;  %v858_v51 = vld [vmem:[#allocation8 + $0x68] sm:$0xff] }
  0x5c   : > { %1139 = vmatprep.subr.mxu0 %v332_v9  ;;  %v860_v49 = vld [vmem:[#allocation8 + $0x78] sm:$0xff]  ;;  %v857_v52 = vld [vmem:[#allocation8 + $0x60] sm:$0xff]  ;;  %v855_v54 = vld [vmem:[#allocation8 + $0x50] sm:$0xff] }
  0x5d   : > { %1140 = vmatpush3.msra.mxu0 %v332_v9  ;;  %1204 = vmatpush3.msra.mxu1 %v860_v49  ;;  %v856_v53 = vld [vmem:[#allocation8 + $0x58] sm:$0xff]  ;;  %v854_v55 = vld [vmem:[#allocation8 + $0x48] sm:$0xff]  ;;  %v853_v56 = vld [vmem:[#allocation8 + $0x40] sm:$0xff] }
  0x5e   : > { %1141 = vmatprep.subr.mxu0 %v331_v10  ;;  %1205 = vmatprep.subr.mxu1 %v1496_v48  ;;  %v852_v57 = vld [vmem:[#allocation8 + $0x38] sm:$0xff]  ;;  %v851_v58 = vld [vmem:[#allocation8 + $0x30] sm:$0xff]  ;;  %v850_v59 = vld [vmem:[#allocation8 + $0x28] sm:$0xff] }
  0x5f   : > { %1142 = vmatpush3.msra.mxu0 %v331_v10  ;;  %1206 = vmatpush3.msra.mxu1 %v859_v50  ;;  %v849_v60 = vld [vmem:[#allocation8 + $0x20] sm:$0xff]  ;;  %v848_v61 = vld [vmem:[#allocation8 + $0x18] sm:$0xff]  ;;  %v847_v62 = vld [vmem:[#allocation8 + $0x10] sm:$0xff] }
  0x60   : > { %1143 = vmatprep.subr.mxu0 %v330_v11  ;;  %1207 = vmatprep.subr.mxu1 %v1496_v48  ;;  %v846_v63 = vld [vmem:[#allocation8 + $0x8] sm:$0xff]  ;;  %v845_v0 = vld [vmem:[#allocation8] sm:$0xff]  ;;  %v1709_v2 = vld [vmem:[%s1795_s2] ss:$0 sm:$0xff] }
  0x61   : > { %1144 = vmatpush3.msra.mxu0 %v330_v11  ;;  %1208 = vmatpush3.msra.mxu1 %v858_v51 }
  0x62   : > { %1145 = vmatprep.subr.mxu0 %v329_v12  ;;  %1209 = vmatprep.subr.mxu1 %v1496_v48 }
  0x63   : > { %1146 = vmatpush3.msra.mxu0 %v329_v12  ;;  %1210 = vmatpush3.msra.mxu1 %v857_v52 }
  0x64   : > { %1147 = vmatprep.subr.mxu0 %v328_v13  ;;  %1211 = vmatprep.subr.mxu1 %v1496_v48 }
  0x65   : > { %1148 = vmatpush3.msra.mxu0 %v328_v13  ;;  %1212 = vmatpush3.msra.mxu1 %v856_v53 }
  0x66   : > { %1149 = vmatprep.subr.mxu0 %v327_v14  ;;  %1213 = vmatprep.subr.mxu1 %v1496_v48 }
  0x67   : > { %1150 = vmatpush3.msra.mxu0 %v327_v14  ;;  %1214 = vmatpush3.msra.mxu1 %v855_v54 }
  0x68   : > { %1151 = vmatprep.subr.mxu0 %v326_v15  ;;  %1215 = vmatprep.subr.mxu1 %v1496_v48 }
  0x69   : > { %1152 = vmatpush3.msra.mxu0 %v326_v15  ;;  %1216 = vmatpush3.msra.mxu1 %v854_v55 }
  0x6a   : > { %1153 = vmatprep.subr.mxu0 %v325_v16  ;;  %1217 = vmatprep.subr.mxu1 %v1496_v48 }
  0x6b   : > { %1154 = vmatpush3.msra.mxu0 %v325_v16  ;;  %1218 = vmatpush3.msra.mxu1 %v853_v56 }
  0x6c   : > { %1156 = vmatmul.mubr.f32.vlgmr.msra.gmra.mxu0 %v294_v17  ;;  %1219 = vmatprep.subr.mxu1 %v1496_v48 }
  0x6d   : > { %1158 = vmatprep.mubr.f32.mxu0 %v295_v18  ;;  %1220 = vmatpush3.msra.mxu1 %v852_v57 }
  0x6e   : > { %1221 = vmatprep.subr.mxu1 %v1496_v48 }
  0x6f   : > { %1222 = vmatpush3.msra.mxu1 %v851_v58 }
  0x70   : > { %1159 = vmatmul.mubr.f32.gmra.mxu0 %v296_v19  ;;  %1223 = vmatprep.subr.mxu1 %v1496_v48 }
  0x71   : > { %1161 = vmatprep.mubr.f32.mxu0 %v297_v20  ;;  %1224 = vmatpush3.msra.mxu1 %v850_v59 }
  0x72   : > { %1225 = vmatprep.subr.mxu1 %v1496_v48 }
  0x73   : > { %1226 = vmatpush3.msra.mxu1 %v849_v60 }
  0x74   : > { %1162 = vmatmul.mubr.f32.gmra.mxu0 %v298_v21  ;;  %1227 = vmatprep.subr.mxu1 %v1496_v48 }
  0x75   : > { %1164 = vmatprep.mubr.f32.mxu0 %v299_v22  ;;  %1228 = vmatpush3.msra.mxu1 %v848_v61 }
  0x76   : > { %1229 = vmatprep.subr.mxu1 %v1496_v48 }
  0x77   : > { %1230 = vmatpush3.msra.mxu1 %v847_v62 }
  0x78   : > { %1165 = vmatmul.mubr.f32.gmra.mxu0 %v300_v23  ;;  %1231 = vmatprep.subr.mxu1 %v1496_v48 }
  0x79   : > { %1167 = vmatprep.mubr.f32.mxu0 %v301_v24  ;;  %1232 = vmatpush3.msra.mxu1 %v846_v63 }
  0x7a   : > { %1233 = vmatprep.subr.mxu1 %v1496_v48 }
  0x7b   : > { %1234 = vmatpush3.msra.mxu1 %v845_v0 }
  0x7c   : > { %1168 = vmatmul.mubr.f32.gmra.mxu0 %v302_v25 }
  0x7d   : > { %1170 = vmatprep.mubr.f32.mxu0 %v303_v26 }
  0x80   : > { %1171 = vmatmul.mubr.f32.gmra.mxu0 %v304_v27 }
  0x81   : > { %1173 = vmatprep.mubr.f32.mxu0 %v305_v28 }
  0x84   : > { %1174 = vmatmul.mubr.f32.gmra.mxu0 %v306_v29 }
  0x85   : > { %1176 = vmatprep.mubr.f32.mxu0 %v307_v30 }
  0x88   : > { %1177 = vmatmul.mubr.f32.gmra.mxu0 %v308_v31 }
  0x89   : > { %1179 = vmatprep.mubr.f32.mxu0 %v309_v32 }
  0x8c   : > { %1180 = vmatmul.mubr.f32.gmra.mxu0 %v310_v33 }
  0x8d   : > { %1182 = vmatprep.mubr.f32.mxu0 %v311_v34 }
  0x90   : > { %1183 = vmatmul.mubr.f32.gmra.mxu0 %v312_v35 }
  0x91   : > { %1185 = vmatprep.mubr.f32.mxu0 %v313_v36 }
  0x94   : > { %1186 = vmatmul.mubr.f32.gmra.mxu0 %v314_v37 }
  0x95   : > { %1188 = vmatprep.mubr.f32.mxu0 %v315_v38 }
  0x98   : > { %1189 = vmatmul.mubr.f32.gmra.mxu0 %v316_v39 }
  0x99   : > { %1191 = vmatprep.mubr.f32.mxu0 %v317_v40 }
  0x9c   : > { %1192 = vmatmul.mubr.f32.gmra.mxu0 %v318_v41 }
  0x9d   : > { %1194 = vmatprep.mubr.f32.mxu0 %v319_v42 }
  0xa0   : > { %1195 = vmatmul.mubr.f32.gmra.mxu0 %v320_v43 }
  0xa1   : > { %1197 = vmatprep.mubr.f32.mxu0 %v321_v44 }
  0xa4   : > { %1198 = vmatmul.mubr.f32.gmra.mxu0 %v322_v45 }
  0xa5   : > { %1200 = vmatprep.mubr.f32.mxu0 %v323_v46 }
  0xa8   : > { %1201 = vmatmul.mubr.f32.gmra.mxu0 %v324_v47 }
 0x12c   : > { %v1157_v1 = vpop.f32.mrf.mxu0 }
 0x12d   : > { %v420_v4 = vadd.f32 %v1157_v1, %v1709_v2 }
 0x12e   : > { %v414_v3 = vpop.f32.mrf.mxu0 }
 0x12f   : > { %v415_v5 = vadd.f32 %v1709_v2, %v414_v3  ;;  %v574_v9 = vmax.f32 %v420_v4, 0.0 }
 0x130   : > { %v1160_v6 = vpop.f32.mrf.mxu0 }
 0x131   : > { %v573_v7 = vmax.f32 %v415_v5, 0.0  ;;  %v430_v10 = vadd.f32 %v1160_v6, %v1709_v2 }
 0x132   : > { %v424_v8 = vpop.f32.mrf.mxu0 }
 0x133   : > { %v425_v11 = vadd.f32 %v1709_v2, %v424_v8  ;;  %v801_v13 = vadd.f32 %v574_v9, %v573_v7  ;;  %v576_v16 = vmax.f32 %v430_v10, 0.0 }
 0x134   : > { %v1163_v12 = vpop.f32.mrf.mxu0 }
 0x135   : > { %v575_v14 = vmax.f32 %v425_v11, 0.0  ;;  %v440_v18 = vadd.f32 %v1163_v12, %v1709_v2 }
 0x136   : > { %v434_v15 = vpop.f32.mrf.mxu0 }
 0x137   : > { %v802_v17 = vadd.f32 %v801_v13, %v575_v14  ;;  %v435_v19 = vadd.f32 %v1709_v2, %v434_v15  ;;  %v578_v24 = vmax.f32 %v440_v18, 0.0 }
 0x138   : > { %v1166_v20 = vpop.f32.mrf.mxu0 }
 0x139   : > { %v577_v21 = vmax.f32 %v435_v19, 0.0  ;;  %v803_v22 = vadd.f32 %v802_v17, %v576_v16  ;;  %v450_v26 = vadd.f32 %v1166_v20, %v1709_v2 }
 0x13a   : > { %v444_v23 = vpop.f32.mrf.mxu0 }
 0x13b   : > { %v804_v25 = vadd.f32 %v803_v22, %v577_v21  ;;  %v445_v27 = vadd.f32 %v1709_v2, %v444_v23  ;;  %v580_v32 = vmax.f32 %v450_v26, 0.0 }
 0x13c   : > { %v1169_v28 = vpop.f32.mrf.mxu0 }
 0x13d   : > { %v579_v29 = vmax.f32 %v445_v27, 0.0  ;;  %v805_v30 = vadd.f32 %v804_v25, %v578_v24  ;;  %v460_v34 = vadd.f32 %v1169_v28, %v1709_v2 }
 0x13e   : > { %v454_v31 = vpop.f32.mrf.mxu0 }
 0x13f   : > { %v806_v33 = vadd.f32 %v805_v30, %v579_v29  ;;  %v455_v35 = vadd.f32 %v1709_v2, %v454_v31  ;;  %v582_v40 = vmax.f32 %v460_v34, 0.0 }
 0x140   : > { %v1172_v36 = vpop.f32.mrf.mxu0 }
 0x141   : > { %v581_v37 = vmax.f32 %v455_v35, 0.0  ;;  %v807_v38 = vadd.f32 %v806_v33, %v580_v32  ;;  %v470_v42 = vadd.f32 %v1172_v36, %v1709_v2 }
 0x142   : > { %v464_v39 = vpop.f32.mrf.mxu0 }
 0x143   : > { %v808_v41 = vadd.f32 %v807_v38, %v581_v37  ;;  %v465_v43 = vadd.f32 %v1709_v2, %v464_v39  ;;  %v584_v48 = vmax.f32 %v470_v42, 0.0 }
 0x144   : > { %v1175_v44 = vpop.f32.mrf.mxu0 }
 0x145   : > { %v583_v45 = vmax.f32 %v465_v43, 0.0  ;;  %v809_v46 = vadd.f32 %v808_v41, %v582_v40  ;;  %v480_v50 = vadd.f32 %v1175_v44, %v1709_v2 }
 0x146   : > { %v474_v47 = vpop.f32.mrf.mxu0 }
 0x147   : > { %v810_v49 = vadd.f32 %v809_v46, %v583_v45  ;;  %v475_v51 = vadd.f32 %v1709_v2, %v474_v47  ;;  %v586_v56 = vmax.f32 %v480_v50, 0.0 }
 0x148   : > { %v1178_v52 = vpop.f32.mrf.mxu0 }
 0x149   : > { %v585_v53 = vmax.f32 %v475_v51, 0.0  ;;  %v811_v54 = vadd.f32 %v810_v49, %v584_v48  ;;  %v490_v58 = vadd.f32 %v1178_v52, %v1709_v2 }
 0x14a   : > { %v484_v55 = vpop.f32.mrf.mxu0 }
 0x14b   : > { %v812_v57 = vadd.f32 %v811_v54, %v585_v53  ;;  %v485_v59 = vadd.f32 %v1709_v2, %v484_v55  ;;  %v588_v0 = vmax.f32 %v490_v58, 0.0 }
 0x14c   : > { %v1181_v60 = vpop.f32.mrf.mxu0 }
 0x14d   : > { %v587_v61 = vmax.f32 %v485_v59, 0.0  ;;  %v813_v62 = vadd.f32 %v812_v57, %v586_v56  ;;  %v500_v3 = vadd.f32 %v1181_v60, %v1709_v2 }
 0x14e   : > { %v494_v63 = vpop.f32.mrf.mxu0 }
 0x14f   : > { %v814_v1 = vadd.f32 %v813_v62, %v587_v61  ;;  %v495_v4 = vadd.f32 %v1709_v2, %v494_v63  ;;  %v590_v9 = vmax.f32 %v500_v3, 0.0 }
 0x150   : > { %v1184_v5 = vpop.f32.mrf.mxu0 }
 0x151   : > { %v589_v6 = vmax.f32 %v495_v4, 0.0  ;;  %v815_v7 = vadd.f32 %v814_v1, %v588_v0  ;;  %v510_v11 = vadd.f32 %v1184_v5, %v1709_v2 }
 0x152   : > { %v504_v8 = vpop.f32.mrf.mxu0 }
 0x153   : > { %v816_v10 = vadd.f32 %v815_v7, %v589_v6  ;;  %v505_v12 = vadd.f32 %v1709_v2, %v504_v8  ;;  %v592_v17 = vmax.f32 %v510_v11, 0.0  ;;  %v800_v8 = vld [vmem:[#allocation2] sm:$0x1] }
 0x154   : > { %v1187_v13 = vpop.f32.mrf.mxu0 }
 0x155   : > { %v591_v14 = vmax.f32 %v505_v12, 0.0  ;;  %v817_v15 = vadd.f32 %v816_v10, %v590_v9  ;;  %v520_v19 = vadd.f32 %v1187_v13, %v1709_v2  ;;  %v861_v12 = vld [vmem:[%s1797_s4] sm:$0x1] }
 0x156   : > { %v514_v16 = vpop.f32.mrf.mxu0 }
 0x157   : > { %v818_v18 = vadd.f32 %v817_v15, %v591_v14  ;;  %v515_v20 = vadd.f32 %v1709_v2, %v514_v16  ;;  %v594_v25 = vmax.f32 %v520_v19, 0.0 }
 0x158   : > { %v1190_v21 = vpop.f32.mrf.mxu0 }
 0x159   : > { %v593_v22 = vmax.f32 %v515_v20, 0.0  ;;  %v819_v23 = vadd.f32 %v818_v18, %v592_v17  ;;  %v530_v27 = vadd.f32 %v1190_v21, %v1709_v2 }
 0x15a   : > { %v524_v24 = vpop.f32.mrf.mxu0 }
 0x15b   : > { %v820_v26 = vadd.f32 %v819_v23, %v593_v22  ;;  %v525_v28 = vadd.f32 %v1709_v2, %v524_v24  ;;  %v596_v33 = vmax.f32 %v530_v27, 0.0 }
 0x15c   : > { %v1193_v29 = vpop.f32.mrf.mxu0 }
 0x15d   : > { %v595_v30 = vmax.f32 %v525_v28, 0.0  ;;  %v821_v31 = vadd.f32 %v820_v26, %v594_v25  ;;  %v540_v35 = vadd.f32 %v1193_v29, %v1709_v2 }
 0x15e   : > { %v534_v32 = vpop.f32.mrf.mxu0 }
 0x15f   : > { %v822_v34 = vadd.f32 %v821_v31, %v595_v30  ;;  %v535_v36 = vadd.f32 %v1709_v2, %v534_v32  ;;  %v598_v41 = vmax.f32 %v540_v35, 0.0 }
 0x160   : > { %v1196_v37 = vpop.f32.mrf.mxu0 }
 0x161   : > { %v597_v38 = vmax.f32 %v535_v36, 0.0  ;;  %v823_v39 = vadd.f32 %v822_v34, %v596_v33  ;;  %v550_v43 = vadd.f32 %v1196_v37, %v1709_v2 }
 0x162   : > { %v544_v40 = vpop.f32.mrf.mxu0 }
 0x163   : > { %v824_v42 = vadd.f32 %v823_v39, %v597_v38  ;;  %v545_v44 = vadd.f32 %v1709_v2, %v544_v40  ;;  %v600_v49 = vmax.f32 %v550_v43, 0.0 }
 0x164   : > { %v1199_v45 = vpop.f32.mrf.mxu0 }
 0x165   : > { %v599_v46 = vmax.f32 %v545_v44, 0.0  ;;  %v825_v47 = vadd.f32 %v824_v42, %v598_v41  ;;  %v560_v51 = vadd.f32 %v1199_v45, %v1709_v2 }
 0x166   : > { %v554_v48 = vpop.f32.mrf.mxu0 }
 0x167   : > { %v826_v50 = vadd.f32 %v825_v47, %v599_v46  ;;  %v555_v52 = vadd.f32 %v1709_v2, %v554_v48  ;;  %v602_v57 = vmax.f32 %v560_v51, 0.0 }
 0x168   : > { %v1202_v53 = vpop.f32.mrf.mxu0 }
 0x169   : > { %v601_v54 = vmax.f32 %v555_v52, 0.0  ;;  %v827_v55 = vadd.f32 %v826_v50, %v600_v49  ;;  %v570_v59 = vadd.f32 %v1202_v53, %v1709_v2 }
 0x16a   : > { %v564_v56 = vpop.f32.mrf.mxu0 }
 0x16b   : > { %v828_v58 = vadd.f32 %v827_v55, %v601_v54  ;;  %v565_v60 = vadd.f32 %v1709_v2, %v564_v56  ;;  %v604_v63 = vmax.f32 %v570_v59, 0.0 }
 0x16d   : > { %v603_v61 = vmax.f32 %v565_v60, 0.0  ;;  %v829_v62 = vadd.f32 %v828_v58, %v602_v57 }
 0x16f   : > { %v830_v0 = vadd.f32 %v829_v62, %v603_v61 }
 0x171   : > { %v831_v1 = vadd.f32 %v830_v0, %v604_v63 }
 0x173   : > { %v832_v3 = vrot.slane %v831_v1, 4 }
 0x175   : > { %v833_v4 = vadd.f32 %v832_v3, %v831_v1 }
 0x177   : > { %v834_v5 = vrot.slane %v833_v4, 2 }
 0x179   : > { %v835_v6 = vadd.f32 %v834_v5, %v833_v4 }
 0x17b   : > { %v836_v7 = vrot.slane %v835_v6, 1 }
 0x17d   : > { %v837_v9 = vadd.f32 %v836_v7, %v835_v6 }
 0x17f   : > { %v838_v10 = vadd.f32 %v837_v9, %v800_v8 }
 0x181   : > { %839 = vst [vmem:[#allocation2] sm:$0x1] %v838_v10 }
 0x188   : > { %v843_v11 = vld [vmem:[#allocation2] sm:$0x1] }
 0x189   : > { %v844_v2 = vmul.f32 0.00390625, %v843_v11 }
 0x18b   : > { %1236 = vmatmul.mubr.f32.vlgmr.msra.gmra.mxu1 %v844_v2 }
 0x24b   : > { %v928_v13 = vpop.f32.mrf.mxu1 }
 0x24c   : > { %v929_v14 = vadd.f32 %v928_v13, %v861_v12 }
 0x24d   : > { %v1237_v15 = vpop.f32.mrf.mxu1 }
 0x24e   : > { %932 = vst [vmem:[%s285_s17] sm:$0x1] %v929_v14 }
 0x24f   : > { %1418 = shalt.err (!%p1415_p2)
}
 0x250   : > { %s1419_s24 = scalar_lea.hbm %s1751_s11, 16  ;;  %s1423_s28 = scalar_lea.hbm %s1798_s5, 32 }
 0x251   : > { %p1420_p9 = scmp.ne.s32.totalorder %s1751_s11, %s1419_s24  ;;  %p1424_p0 = scmp.lt.s32.totalorder %s1751_s11, %s1798_s5 }
 0x252   : > { %p1425_p7 = scmp.lt.s32.totalorder %s1423_s28, %s1419_s24 }
 0x253   : > { %p1421_p12 = pnand %p1420_p9, %p1630_p3 }
 0x254   : > { %p1426_p5 = por %p1425_p7, %p1424_p0 }
 0x255   : > { %p1422_p13 = pneg %p1421_p12 }
 0x257   : > { %p1427_p1 = pnand %p1426_p5, %p1422_p13 }
 0x259   : > { %1430 = shalt.err (!%p1427_p1)
}
 0x25a   : > { %1248 = dma.vmem_to_hbm [thread:$0]  (%p1630_p3), %s947_s27, 16, %s1751_s11, %s934_s10  }
 0x25b PF: > { %s958_s13 = sand.u32 1, %s1469_s18   ;;  %p1813_p4 = scmp.ne.s32.totalorder %s1805_s29, 0 }
 0x25c   : > { %p1814_p6 = scmp.ge.s32.totalorder %s1489_s23, 2  ;;  %s959_s17 = scalar_lea.sflag [#allocation5], %s958_s13 }
 0x25e   : > { %p1262_p8 = pnand %p1814_p6, %p1813_p4 }
 0x260   : > { %p1263_p10 = pneg %p1262_p8 }
 0x262   : > { %1464 = dma.done.wait (%p1263_p10), %s959_s17, 16  }
 0x263   : > { %1466 = vsyncadd (%p1263_p10), %s959_s17, 4294967280  ;;  %s22_s23 = sadd.s32 1, %s1489_s23   ;;  %s1815_s18 = smov %s1473_s19 }
 0x264   : > { %p19_p11 = scmp.ge.s32.totalorder %s22_s23, 4   ;;  %s1816_s19 = smov %s1477_s20 }
 0x265   : > { %s1817_s20 = smov %s1639_s14  ;;  %s1818_s21 = smov %s1485_s22 }
 0x266   : > { %s1819_s22 = smov %s1821_s25  ;;  %21 = sbr.rel (!%p19_p11) target bundleno = 9 (0x9), region = 101 }
 0x26b   :  { %963 = vsyncpa [#allocation4], 1 }
 0x26c   :  { %965 = vsyncpa [#allocation4 + $0x1], 1 }
 0x26d   :  { %966 = vsyncpa [#allocation7], 1 }
 0x26e   :  { %967 = vsyncpa [#allocation5], 1 }
 0x26f   :  { %969 = vsyncpa [#allocation5 + $0x1], 1 }

</bundles_post_ra>
